<compile_context>
chip_gen: v6e
topology: v6e:2x2x1
jax: 0.10.0
libtpu: 0.0.40
codegen_flags: <defaults>
</compile_context>

<pallas_src>
import functools

import jax
import jax.numpy as jnp
from jax.experimental import pallas as pl
from jax.experimental.pallas import tpu as pltpu


def _round_up(n, m):
    return (n + m - 1) // m * m


def _cdiv(a, b):
    return (a + b - 1) // b


def _vmem_capacity_bytes():
    try:
        return int(pltpu.get_tpu_info().vmem_capacity_bytes)
    except Exception:
        return 64 * 1024 * 1024            # conservative default (v7x-sized VMEM)


def _pick_tiles(budget, bytes_per_elem, n_rows, hw, sub):
    """Pick an (R, T) tile for a (n_rows, hw) array.

    T is a multiple of 128 (or == hw), R a multiple of `sub` (or == n_rows), with
    R * T * bytes_per_elem kept within `budget` (best effort, at least the minimal
    legal tile).  Lane width is maximized first (biggest measured lever)."""
    hw128 = _round_up(hw, 128)
    r0 = sub if n_rows > sub else n_rows
    t_units = max(1, budget // (bytes_per_elem * r0 * 128))
    T = 128 * max(1, min(t_units, hw128 // 128))
    if T >= hw:
        T = hw                              # full extent: always legal, no masking
    r_units = max(1, budget // (bytes_per_elem * sub * T))
    R = sub * max(1, min(r_units, _cdiv(n_rows, sub)))
    if R >= n_rows:
        R = n_rows                          # full extent: always legal
    return int(R), int(T)


# --------------------------- kernels ---------------------------

def _pool_kernel(x_ref, sum_ref, *, hw, t):
    """x_ref: (R, T) input tile; sum_ref: (R, 1) f32 accumulator resident across
    the hw ("arbitrary") grid axis."""
    @pl.when(pl.program_id(1) == 0)
    def _():
        sum_ref[...] = jnp.zeros_like(sum_ref)

    x = x_ref[...]
    if hw % t != 0:
        # Ragged final hw tile: out-of-bounds lanes hold garbage -> mask before sum.
        lane = jax.lax.broadcasted_iota(jnp.int32, x.shape, 1)
        x = jnp.where(pl.program_id(1) * t + lane < hw, x, jnp.zeros_like(x))
    sum_ref[...] += jnp.sum(x.astype(jnp.float32), axis=-1, keepdims=True)


def _scale_kernel(x_ref, s_ref, o_ref):
    """x_ref/o_ref: (R, T); s_ref: (R, 1) per-row scale (same dtype as x).
    Ragged tiles need no masking: Pallas clips the write-back at array bounds."""
    o_ref[...] = (x_ref[...] * s_ref[...]).astype(o_ref.dtype)


def _fused_kernel(x_ref, w1t_ref, b1_ref, w2_ref, b2_ref, o_ref, *, hw):
    """Single-pass SE block on one batch slab resident in VMEM.
    x_ref/o_ref: (1, C, HW); w1t: (C, hid); b1: (1, hid); w2: (C, hid); b2: (C, 1).
    The tiny MLP is done with broadcast-mul + reductions (no degenerate matmuls)."""
    x = x_ref[0]                                                            # (C, HW)
    pooled = jnp.sum(x.astype(jnp.float32), axis=-1, keepdims=True) * (1.0 / hw)  # (C, 1)
    # h[1, j] = relu(sum_c w1[j, c] * pooled[c] + b1[j])  via sublane reduce.
    h = jnp.sum(w1t_ref[...] * pooled, axis=0, keepdims=True) + b1_ref[...]       # (1, hid)
    h = jnp.maximum(h, 0.0)
    # s[c, 1] = sigmoid(sum_j w2[c, j] * h[j] + b2[c])    via lane reduce.
    s = jnp.sum(w2_ref[...] * h, axis=1, keepdims=True) + b2_ref[...]             # (C, 1)
    s = jax.nn.sigmoid(s)
    o_ref[0] = (x * s.astype(x.dtype)).astype(o_ref.dtype)


# --------------------------- wrapper ---------------------------

@functools.partial(jax.jit, static_argnames=("force_two_pass", "_budget_override"))
def attention_block(x_nchw, w1, b1, w2, b2, force_two_pass=False, _budget_override=None):
    """x_nchw: (B, C, H, W).  w1: (hid, C), b1: (hid,), w2: (C, hid), b2: (C,)
    (squeezed 1x1-conv weights)."""
    B, C, H, W = x_nchw.shape
    HW = H * W
    BC = B * C
    dtype = x_nchw.dtype
    itemsize = jnp.dtype(dtype).itemsize
    sub = {4: 8, 2: 16, 1: 32}.get(itemsize, 8)      # sublane packing for dtype

    # Generation-aware pipeline-footprint budget (v7x: 64 MiB VMEM; v5e/v6e: 128 MiB).
    vmem_cap = _vmem_capacity_bytes()
    budget = int(min(28 * 1024 * 1024, max(8 * 1024 * 1024, (2 * vmem_cap) // 5)))
    if _budget_override is not None:
        budget = int(_budget_override)
    vmem_limit = int(max(16 * 1024 * 1024,
                         min((3 * vmem_cap) // 4, budget + 8 * 1024 * 1024)))

    w1f = jnp.asarray(w1, jnp.float32)
    b1f = jnp.asarray(b1, jnp.float32)
    w2f = jnp.asarray(w2, jnp.float32)
    b2f = jnp.asarray(b2, jnp.float32)
    hid = w1f.shape[0]

    # ---------- Fused single-pass path (1 read + 1 write of x) ----------
    c_pad = _round_up(C, sub)
    hw128 = _round_up(HW, 128)
    # in (2 bufs) + out (2 bufs) + native product temp + f32 reduce temp, plus weights.
    fused_footprint = c_pad * hw128 * (5 * itemsize + 4) + 4 * (2 * hid * C + hid + C)
    if (not force_two_pass) and fused_footprint <= budget:
        x3 = x_nchw.reshape(B, C, HW)
        out3 = pl.pallas_call(
            functools.partial(_fused_kernel, hw=HW),
            out_shape=jax.ShapeDtypeStruct((B, C, HW), dtype),
            grid_spec=pltpu.PrefetchScalarGridSpec(
                num_scalar_prefetch=0,
                grid=(B,),
                in_specs=[
                    pl.BlockSpec((1, C, HW), lambda b: (b, 0, 0)),
                    pl.BlockSpec((C, hid), lambda b: (0, 0)),     # w1^T
                    pl.BlockSpec((1, hid), lambda b: (0, 0)),     # b1
                    pl.BlockSpec((C, hid), lambda b: (0, 0)),     # w2
                    pl.BlockSpec((C, 1), lambda b: (0, 0)),       # b2
                ],
                out_specs=pl.BlockSpec((1, C, HW), lambda b: (b, 0, 0)),
            ),
            compiler_params=pltpu.CompilerParams(
                dimension_semantics=("parallel",),
                vmem_limit_bytes=vmem_limit),
            cost_estimate=pl.CostEstimate(
                flops=2 * B * C * HW + 4 * B * hid * C,
                transcendentals=B * C,
                bytes_accessed=2 * B * C * HW * itemsize),
        )(x3, w1f.T, b1f.reshape(1, hid), w2f, b2f.reshape(C, 1))
        return out3.reshape(B, C, H, W)

    # ---------- Two-pass fallback: row-packed (B*C, HW) layout ----------
    x2 = x_nchw.reshape(BC, HW)

    # Phase 1: tiled global-sum reduction (accumulator output resident across hw).
    pool_bpe = 3 * itemsize + 4            # 2x in (double-buffered) + select temp + f32 temp
    R_p, T_p = _pick_tiles(budget, pool_bpe, BC, HW, sub)
    sums = pl.pallas_call(
        functools.partial(_pool_kernel, hw=HW, t=T_p),
        out_shape=jax.ShapeDtypeStruct((BC, 1), jnp.float32),
        grid_spec=pltpu.PrefetchScalarGridSpec(
            num_scalar_prefetch=0,
            grid=(_cdiv(BC, R_p), _cdiv(HW, T_p)),
            in_specs=[pl.BlockSpec((R_p, T_p), lambda r, t: (r, t))],
            out_specs=pl.BlockSpec((R_p, 1), lambda r, t: (r, 0)),
        ),
        compiler_params=pltpu.CompilerParams(
            dimension_semantics=("parallel", "arbitrary"),
            vmem_limit_bytes=vmem_limit),
        cost_estimate=pl.CostEstimate(
            flops=BC * HW,
            transcendentals=0,
            bytes_accessed=BC * HW * itemsize + BC * 4),
    )(x2)

    # Tiny squeeze/excite MLP + sigmoid, once per call (negligible FLOPs, fused by XLA).
    pooled = sums.reshape(B, C) * jnp.float32(1.0 / HW)
    h = jnp.maximum(pooled @ w1f.T + b1f, 0.0)                     # (B, hid)
    s = jax.nn.sigmoid(h @ w2f.T + b2f)                            # (B, C) f32
    s2 = s.reshape(BC, 1).astype(dtype)                            # native-dtype multiply

    # Phase 2: tiled elementwise scale (the HBM-bound part).
    scale_bpe = 5 * itemsize               # 2x in + 2x out + product temp
    R_s, T_s = _pick_tiles(budget, scale_bpe, BC, HW, sub)
    out2 = pl.pallas_call(
        _scale_kernel,
        out_shape=jax.ShapeDtypeStruct((BC, HW), dtype),
        grid_spec=pltpu.PrefetchScalarGridSpec(
            num_scalar_prefetch=0,
            grid=(_cdiv(BC, R_s), _cdiv(HW, T_s)),
            in_specs=[pl.BlockSpec((R_s, T_s), lambda r, t: (r, t)),
                      pl.BlockSpec((R_s, 1), lambda r, t: (r, 0))],
            out_specs=pl.BlockSpec((R_s, T_s), lambda r, t: (r, t)),
        ),
        compiler_params=pltpu.CompilerParams(
            dimension_semantics=("parallel", "parallel"),
            vmem_limit_bytes=vmem_limit),
        cost_estimate=pl.CostEstimate(
            flops=BC * HW,
            transcendentals=0,
            bytes_accessed=2 * BC * HW * itemsize + BC * itemsize),
    )(x2, s2)
    return out2.reshape(B, C, H, W)


def _reference(x, w1, b1, w2, b2):
    # Pure-JAX reference of the PyTorch forward pass.
    pooled = jnp.mean(x.astype(jnp.float32), axis=(2, 3))            # (B, C)
    h = jnp.maximum(pooled @ jnp.asarray(w1, jnp.float32).T + b1, 0.0)
    s = jax.nn.sigmoid(h @ jnp.asarray(w2, jnp.float32).T + b2)      # (B, C)
    return (x.astype(jnp.float32) * s[:, :, None, None]).astype(x.dtype)


if __name__ == "__main__":
    key = jax.random.PRNGKey(0)
    kx, k1, k2, k3, k4, kx2 = jax.random.split(key, 6)

    B, C, H, W = 2, 4, 16, 16
    ratio = 1
    hid = C // ratio

    x = jax.random.normal(kx, (B, C, H, W), dtype=jnp.float32)
    # Conv2d weights are (out, in, 1, 1); we keep the squeezed (out, in) form.
    w1 = jax.random.normal(k1, (hid, C), dtype=jnp.float32) * 0.1
    b1 = jax.random.normal(k2, (hid,), dtype=jnp.float32) * 0.1
    w2 = jax.random.normal(k3, (C, hid), dtype=jnp.float32) * 0.1
    b2 = jax.random.normal(k4, (C,), dtype=jnp.float32) * 0.1

    # 1) Fused single-pass path (the normal path at this size).
    out = attention_block(x, w1, b1, w2, b2)
    jax.block_until_ready(out)
    ref = _reference(x, w1, b1, w2, b2)
    assert out.shape == (B, C, H, W)
    assert jnp.allclose(out, ref, atol=1e-5, rtol=1e-5), "fused path mismatch"

    # 2) Two-pass tiled fallback (same shapes, forced).
    out_tp = attention_block(x, w1, b1, w2, b2, force_two_pass=True)
    jax.block_until_ready(out_tp)
    assert jnp.allclose(out_tp, ref, atol=1e-5, rtol=1e-5), "two-pass mismatch"

    # 3) Two-pass fallback with ragged (non-128-multiple) HW and tiny tiles so the
    #    cdiv grid, lane masking, and clipped write-back are actually exercised.
    xr = jax.random.normal(kx2, (B, C, 20, 20), dtype=jnp.float32)
    out_r = attention_block(xr, w1, b1, w2, b2, force_two_pass=True,
                            _budget_override=16 * 1024)
    jax.block_until_ready(out_r)
    ref_r = _reference(xr, w1, b1, w2, b2)
    assert jnp.allclose(out_r, ref_r, atol=1e-5, rtol=1e-5), "ragged two-pass mismatch"

    print("KERNEL_OK")
</pallas_src>

<mosaic_0001>
module attributes {stable_mosaic.version = 11 : i64} {
  func.func @_fused_kernel(%arg0: i32, %arg1: memref<1x4x256xf32, #tpu.memory_space<vmem>>, %arg2: memref<4x4xf32, #tpu.memory_space<vmem>>, %arg3: memref<1x4xf32, #tpu.memory_space<vmem>>, %arg4: memref<4x4xf32, #tpu.memory_space<vmem>>, %arg5: memref<4x1xf32, #tpu.memory_space<vmem>>, %arg6: memref<1x4x256xf32, #tpu.memory_space<vmem>>) attributes {dimension_semantics = [#tpu.dimension_semantics<parallel>], iteration_bounds = array<i64: 2>, scalar_prefetch = 0 : i64, scratch_operands = 0 : i64, tpu.core_type = #tpu.core_type<tc>, window_params = [{transform_indices = @transform_0, window_bounds = array<i64: 1, 4, 256>}, {pipeline_mode = #tpu.pipeline_mode<synchronous>, transform_indices = @transform_1, window_bounds = array<i64: 4, 4>}, {pipeline_mode = #tpu.pipeline_mode<synchronous>, transform_indices = @transform_2, window_bounds = array<i64: 1, 4>}, {pipeline_mode = #tpu.pipeline_mode<synchronous>, transform_indices = @transform_3, window_bounds = array<i64: 4, 4>}, {pipeline_mode = #tpu.pipeline_mode<synchronous>, transform_indices = @transform_4, window_bounds = array<i64: 4, 1>}, {transform_indices = @transform_5, window_bounds = array<i64: 1, 4, 256>}]} {
    %c0 = arith.constant 0 : index
    %c0_0 = arith.constant 0 : index
    %c0_1 = arith.constant 0 : index
    %0 = vector.load %arg1[%c0, %c0_0, %c0_1] : memref<1x4x256xf32, #tpu.memory_space<vmem>>, vector<1x4x256xf32>
    %1 = vector.shape_cast %0 : vector<1x4x256xf32> to vector<4x256xf32>
    %cst = arith.constant dense<0.000000e+00> : vector<4xf32>
    %2 = vector.multi_reduction <add>, %1, %cst [1] : vector<4x256xf32> to vector<4xf32>
    %3 = vector.shape_cast %2 : vector<4xf32> to vector<4x1xf32>
    %cst_2 = arith.constant 3.906250e-03 : f32
    %4 = vector.broadcast %cst_2 : f32 to vector<4x1xf32>
    %5 = arith.mulf %3, %4 : vector<4x1xf32>
    %c0_3 = arith.constant 0 : index
    %c0_4 = arith.constant 0 : index
    %6 = vector.load %arg2[%c0_3, %c0_4] : memref<4x4xf32, #tpu.memory_space<vmem>>, vector<4x4xf32>
    %7 = vector.broadcast %5 : vector<4x1xf32> to vector<4x4xf32>
    %8 = arith.mulf %6, %7 : vector<4x4xf32>
    %cst_5 = arith.constant dense<0.000000e+00> : vector<4xf32>
    %9 = vector.multi_reduction <add>, %8, %cst_5 [0] : vector<4x4xf32> to vector<4xf32>
    %10 = vector.shape_cast %9 : vector<4xf32> to vector<1x4xf32>
    %c0_6 = arith.constant 0 : index
    %c0_7 = arith.constant 0 : index
    %11 = vector.load %arg3[%c0_6, %c0_7] : memref<1x4xf32, #tpu.memory_space<vmem>>, vector<1x4xf32>
    %12 = arith.addf %10, %11 : vector<1x4xf32>
    %cst_8 = arith.constant 0.000000e+00 : f32
    %13 = vector.broadcast %cst_8 : f32 to vector<1x4xf32>
    %14 = arith.maximumf %12, %13 : vector<1x4xf32>
    %c0_9 = arith.constant 0 : index
    %c0_10 = arith.constant 0 : index
    %15 = vector.load %arg4[%c0_9, %c0_10] : memref<4x4xf32, #tpu.memory_space<vmem>>, vector<4x4xf32>
    %16 = vector.broadcast %14 : vector<1x4xf32> to vector<4x4xf32>
    %17 = arith.mulf %15, %16 : vector<4x4xf32>
    %cst_11 = arith.constant dense<0.000000e+00> : vector<4xf32>
    %18 = vector.multi_reduction <add>, %17, %cst_11 [1] : vector<4x4xf32> to vector<4xf32>
    %19 = vector.shape_cast %18 : vector<4xf32> to vector<4x1xf32>
    %c0_12 = arith.constant 0 : index
    %c0_13 = arith.constant 0 : index
    %20 = vector.load %arg5[%c0_12, %c0_13] : memref<4x1xf32, #tpu.memory_space<vmem>>, vector<4x1xf32>
    %21 = arith.addf %19, %20 : vector<4x1xf32>
    %22 = arith.negf %21 : vector<4x1xf32>
    %23 = math.exp %22 : vector<4x1xf32>
    %cst_14 = arith.constant 1.000000e+00 : f32
    %24 = vector.broadcast %cst_14 : f32 to vector<4x1xf32>
    %25 = arith.addf %24, %23 : vector<4x1xf32>
    %26 = arith.divf %24, %25 : vector<4x1xf32>
    %27 = vector.broadcast %26 : vector<4x1xf32> to vector<4x256xf32>
    %28 = arith.mulf %1, %27 : vector<4x256xf32>
    %c0_15 = arith.constant 0 : index
    %c0_16 = arith.constant 0 : index
    %c0_17 = arith.constant 0 : index
    %29 = vector.load %arg6[%c0_15, %c0_16, %c0_17] : memref<1x4x256xf32, #tpu.memory_space<vmem>>, vector<1x4x256xf32>
    %30 = vector.shape_cast %29 : vector<1x4x256xf32> to vector<4x256xf32>
    %31 = vector.shape_cast %28 : vector<4x256xf32> to vector<1x4x256xf32>
    tpu.vector_store %arg6[%c0_15, %c0_16, %c0_17], %31 {strides = array<i32>} : memref<1x4x256xf32, #tpu.memory_space<vmem>>, vector<1x4x256xf32>,
    return
  }
  func.func @transform_0(%arg0: i32) -> (i32, i32, i32) {
    %c0_i32 = arith.constant 0 : i32
    %c0_i32_0 = arith.constant 0 : i32
    %c0_i32_1 = arith.constant 0 : i32
    return %arg0, %c0_i32, %c0_i32_0 : i32, i32, i32
  }
  func.func @transform_1(%arg0: i32) -> (i32, i32) {
    %c0_i32 = arith.constant 0 : i32
    %c0_i32_0 = arith.constant 0 : i32
    %c0_i32_1 = arith.constant 0 : i32
    return %c0_i32, %c0_i32_0 : i32, i32
  }
  func.func @transform_2(%arg0: i32) -> (i32, i32) {
    %c0_i32 = arith.constant 0 : i32
    %c0_i32_0 = arith.constant 0 : i32
    %c0_i32_1 = arith.constant 0 : i32
    return %c0_i32, %c0_i32_0 : i32, i32
  }
  func.func @transform_3(%arg0: i32) -> (i32, i32) {
    %c0_i32 = arith.constant 0 : i32
    %c0_i32_0 = arith.constant 0 : i32
    %c0_i32_1 = arith.constant 0 : i32
    return %c0_i32, %c0_i32_0 : i32, i32
  }
  func.func @transform_4(%arg0: i32) -> (i32, i32) {
    %c0_i32 = arith.constant 0 : i32
    %c0_i32_0 = arith.constant 0 : i32
    %c0_i32_1 = arith.constant 0 : i32
    return %c0_i32, %c0_i32_0 : i32, i32
  }
  func.func @transform_5(%arg0: i32) -> (i32, i32, i32) {
    %c0_i32 = arith.constant 0 : i32
    %c0_i32_0 = arith.constant 0 : i32
    %c0_i32_1 = arith.constant 0 : i32
    return %arg0, %c0_i32, %c0_i32_0 : i32, i32, i32
  }
}

</mosaic_0001>

<bundles_post_ra>
// kernel: attention_block.1
= control target key start
LH: loop header
LB: loop body
LE: loop exit
PB: predicated region body
PF: predicated region fallthrough
CT: control target
= control target key end

     0   :  { %s406_s18 = smov 0   ;;  %s444_s0 = inlined_call_operand.vmem [shape: f32[2,4,256], index: 0, kind: input, shape index: {}]   ;;  %s445_s1 = inlined_call_operand.vmem [shape: f32[4,4], index: 1, kind: input, shape index: {}]   ;;  %s446_s2 = inlined_call_operand.vmem [shape: f32[1,4], index: 2, kind: input, shape index: {}]   ;;  %s447_s3 = inlined_call_operand.vmem [shape: f32[4,4], index: 3, kind: input, shape index: {}]   ;;  %s448_s4 = inlined_call_operand.vmem [shape: f32[4,1], index: 4, kind: input, shape index: {}]   ;;  %s449_s5 = inlined_call_operand.vmem [shape: f32[2,4,256], index: 5, kind: output, shape index: {}]  }
   0x1 LB: > { %s335_s19 = sadd.s32 4294967295, %s372_s18   ;;  %p339_p0 = scmp.ge.s32.totalorder %s372_s18, 1  ;;  %s372_s18 = sphi %s406_s18, %s15_s18  }
   0x2   : > { %p187_p1 = scmp.lt.s32.totalorder %s372_s18, 3 }
   0x4   : > { %p188_p2 = pnand %p339_p0, %p187_p1 }
   0x5   : > { %p215_p3 = scmp.lt.s32.totalorder (!%p188_p2), %s335_s19, 1 }
   0x6   : > { %191 = sbr.rel (%p188_p2) target bundleno = 485 (0x1e5), region = 40 }
   0xb   : > { %s451_s19 = smov (!%p215_p3, %s335_s19), 1  ;;  %vm229_vm0 = vcmask 1043456   ;;  %v236_v5 = vld [vmem:[%s445_s1] sm:$0xf]  ;;  %vm238_vm1 = vcmask 27648   ;;  %v250_v13 = vlaneseq  ;;  %v374_v26 = vmov 0  }
   0xc   : > { %s347_s20 = sshll.u32 %s451_s19, 3  ;;  %v246_v17 = vld [vmem:[%s446_s2] sm:$0x1]  ;;  %359 = vset.pattern.permute.xlu1 %v374_v26  ;;  %360 = vset.pattern.permute.xlu0 %v374_v26  ;;  %v375_v34 = vmov 839922192  }
   0xd   : > { %s219_s23 = scalar_lea.vmem %s444_s0, %s347_s20  ;;  %v251_v16 = vshrl.u32 %v250_v13, 7  ;;  %v249_v22 = vld [vmem:[%s447_s3] sm:$0xf]  ;;  %v271_v35 = vunpack.c.l.s4 %v375_v34  ;;  %s224_s9 = scalar_lea.vmem %s449_s5, %s347_s20 }
   0xe   : > { %v225_v0 = vld [vmem:[%s219_s23] sm:$0xff] }
   0xf   : > { %v227_v1 = vcombine.high %v225_v0, %v225_v0  ;;  %v230_v2 = vsel %vm229_vm0, %v225_v0, 0.0  ;;  %v252_v20 = vsub.s32 0, %v251_v16  ;;  %v258_v27 = vld [vmem:[%s448_s4] sm:$0xf]  ;;  %v272_v36 = vunpack.c.0.s8 %v271_v35 }
  0x11   : > { %v231_v3 = vsel %vm229_vm0, %v227_v1, 0.0  ;;  %v275_v37 = vsub.s32 %v272_v36, %v251_v16 }
  0x12   : > { %v232_v4 = vadd.f32 %v231_v3, %v230_v2 }
  0x14   : > { %233 = vadd.xlane.f32.xlu0 %v232_v4 }
  0x9d   : > { %v234_v6 = vpop.xlane.xlu0 %233 }
  0x9e   : > { %v235_v7 = vmul.f32 0.00390625, %v234_v6 }
  0xa0   : > { %v237_v8 = vmul.f32 %v236_v5, %v235_v7 }
  0xa2   : > { %v239_v9 = vsel %vm238_vm1, %v237_v8, 0.0 }
  0xa3   : > { %v240_v10 = vrot.slane %v239_v9, 4 }
  0xa5   : > { %v241_v11 = vadd.f32 %v240_v10, %v239_v9 }
  0xa7   : > { %v242_v12 = vrot.slane %v241_v11, 2 }
  0xa9   : > { %v243_v14 = vadd.f32 %v242_v12, %v241_v11 }
  0xab   : > { %v244_v15 = vrot.slane %v243_v14, 1 }
  0xad   : > { %v245_v18 = vadd.f32 %v244_v15, %v243_v14 }
  0xaf   : > { %v247_v19 = vadd.f32 %v246_v17, %v245_v18 }
  0xb1   : > { %v248_v21 = vmax.f32 %v247_v19, 0.0 }
  0xb3   : > { %v253_v23 = vrot.slane %v248_v21, %v252_v20 }
  0xb5   : > { %v254_v24 = vmul.f32 %v253_v23, %v249_v22 }
  0xb7   : > { %v255_v25 = vsel %vm238_vm1, %v254_v24, 0.0 }
  0xb8   : > { %256 = vadd.xlane.f32.xlu0 %v255_v25 }
 0x141   : > { %v257_v28 = vpop.xlane.xlu0 %256 }
 0x142   : > { %v259_v29 = vadd.f32 %v258_v27, %v257_v28 }
 0x144   : > { %v344_v30 = vmul.f32 -1.442695, %v259_v29 }
 0x146   : > { %362 = vpow2.f32 %v344_v30 }
 0x153   : > { %v363_v31 = vpop.eup %362 }
 0x154   : > { %v263_v32 = vadd.f32 1.0, %v363_v31 }
 0x156   : > { %364 = vrcp.f32 %v263_v32 }
 0x163   : > { %v365_v33 = vpop.eup %364 }
 0x164   : > { %268 = vperm.xlu1 %359, %v365_v33  }
 0x1df   : > { %v269_v38 = vpop.permute.xlu1 %268 }
 0x1e0   : > { %v276_v39 = vrot.slane %v269_v38, %v275_v37 }
 0x1e2   : > { %v278_v40 = vmul.f32 %v276_v39, %v225_v0 }
 0x1e4   : > { %279 = vst [vmem:[%s224_s9] sm:$0xff] %v278_v40 }
 0x1e5 PF: > { %s15_s18 = sadd.s32 1, %s372_s18  }
 0x1e6   : > { %p12_p4 = scmp.ge.s32.totalorder %s15_s18, 4  }
 0x1e8   :  { %14 = sbr.rel (!%p12_p4) target bundleno = 1 (0x1), region = 70 }

</bundles_post_ra>
